<compile_context>
chip_gen: v7x
topology: tpu7x:2x2x1
jax: 0.10.0
libtpu: 0.0.40
codegen_flags: <defaults>
</compile_context>

<pallas_src>
import jax
import jax.numpy as jnp
from jax.experimental import pallas as pl
from jax.experimental.pallas import tpu as pltpu

LANE = 128


def mlp_kernel(x_ref, w1_ref, b1_ref, w2_ref, b2_ref, w3_ref, b3_ref, o_ref):
    # x_ref: (1, tile_b)  -- batch on lanes.  Weights in (out, in) layout.
    x = x_ref[...]
    # Layer 1: Linear(1 -> L) + ReLU.  Contraction dim is 1, so this is an
    # outer product -> VPU broadcast multiply, no MXU round-trip.
    h = jnp.maximum(w1_ref[...] * x + b1_ref[...], 0.0)            # (L, tile_b)
    # Layer 2: Linear(L -> L) + ReLU on the MXU (column-major dataflow).
    h = jnp.dot(w2_ref[...], h, preferred_element_type=jnp.float32)
    h = jnp.maximum(h + b2_ref[...], 0.0)                          # (L, tile_b)
    # Layer 3: Linear(L -> 2) + Sigmoid.  Output block is (2, tile_b): the
    # lane axis is full width, so the store is unmasked and lane-dense.
    h = jnp.dot(w3_ref[...], h, preferred_element_type=jnp.float32)
    o_ref[...] = jax.nn.sigmoid(h + b3_ref[...]).astype(o_ref.dtype)


def linear_relu_forward(x, params, *, tile_b=8192):
    """x: (N, 1) float32. params: PyTorch-layout (out, in) weights and (out, 1) biases."""
    N, in_dim = x.shape
    assert in_dim == 1, "module spec: linear1 has in_channels=1"
    L = params["w1"].shape[0]
    out_dim = params["w3"].shape[0]

    # Batch onto the lane axis: (N, 1) -> (1, N) is a free contiguous reshape.
    xt = x.reshape(1, N)

    # Pick the batch tile: cap by tile_b, round to full lanes, and (when N is
    # big enough) keep at least 2 grid blocks so v7x's two TensorCores both
    # get work.  All resulting tiles are multiples of 128 lanes.
    half = LANE * pl.cdiv(pl.cdiv(N, 2), LANE)
    tile = max(LANE, min(tile_b, half))
    n_blocks = pl.cdiv(N, tile)
    n_pad = n_blocks * tile
    if n_pad != N:
        # <= tile-1 columns of pad on a (1, N) array: negligible HBM traffic.
        xt = jnp.pad(xt, ((0, 0), (0, n_pad - N)))

    grid = (n_blocks,)

    # x / out tile over the batch(lane) axis; weights & biases (~KiB) use a
    # constant (0, 0) index_map so they stay resident across grid steps.
    in_specs = [
        pl.BlockSpec((1, tile), lambda i: (0, i)),          # x  (1, tile)
        pl.BlockSpec((L, 1), lambda i: (0, 0)),             # w1 (L, 1)
        pl.BlockSpec((L, 1), lambda i: (0, 0)),             # b1 (L, 1)
        pl.BlockSpec((L, L), lambda i: (0, 0)),             # w2 (L, L)
        pl.BlockSpec((L, 1), lambda i: (0, 0)),             # b2 (L, 1)
        pl.BlockSpec((out_dim, L), lambda i: (0, 0)),       # w3 (2, L)
        pl.BlockSpec((out_dim, 1), lambda i: (0, 0)),       # b3 (2, 1)
    ]
    out_spec = pl.BlockSpec((out_dim, tile), lambda i: (0, i))

    out_t = pl.pallas_call(
        mlp_kernel,
        out_shape=jax.ShapeDtypeStruct((out_dim, n_pad), jnp.float32),
        grid_spec=pl.GridSpec(
            grid=grid,
            in_specs=in_specs,
            out_specs=out_spec,
        ),
        compiler_params=pltpu.CompilerParams(
            dimension_semantics=("parallel",),
        ),
    )(xt, params["w1"], params["b1"], params["w2"], params["b2"],
      params["w3"], params["b3"])

    # Strip batch padding (<= tile-1 cols) and go back to (N, 2): only ~2*N
    # floats are touched here.
    return out_t[:, :N].T


def init_params(key, l):
    """Deterministic init in PyTorch nn.Linear layout:
       w: (out_features, in_features), b stored as (out_features, 1) columns."""
    k1, k2, k3, k4, k5, k6 = jax.random.split(key, 6)

    def uni(k, shape, fan_in):
        bound = 1.0 / jnp.sqrt(jnp.float32(fan_in))
        return jax.random.uniform(k, shape, jnp.float32, -bound, bound)

    return {
        "w1": uni(k1, (l, 1), 1),
        "b1": uni(k2, (l, 1), 1),
        "w2": uni(k3, (l, l), l),
        "b2": uni(k4, (l, 1), l),
        "w3": uni(k5, (2, l), l),
        "b3": uni(k6, (2, 1), l),
    }


def reference_forward(x, p):
    """Pure-JAX reference with the same (out, in) weight layout as PyTorch."""
    h = jnp.maximum(x @ p["w1"].T + p["b1"].T, 0.0)
    h = jnp.maximum(h @ p["w2"].T + p["b2"].T, 0.0)
    h = h @ p["w3"].T + p["b3"].T
    return jax.nn.sigmoid(h)


if __name__ == "__main__":
    L = 32     # hidden width `l`
    N = 100    # batch (deliberately NOT a multiple of 128 — padding handles it)
    key = jax.random.PRNGKey(0)
    kx, kp = jax.random.split(key)

    x = jax.random.normal(kx, (N, 1), dtype=jnp.float32)
    params = init_params(kp, L)

    out = linear_relu_forward(x, params)
    out = jax.block_until_ready(out)

    ref = reference_forward(x, params)
    assert out.shape == (N, 2), out.shape
    assert jnp.allclose(out, ref, atol=1e-5, rtol=1e-5), "mismatch vs reference"

    print("KERNEL_OK")
</pallas_src>

<mosaic_0001>
module attributes {stable_mosaic.version = 11 : i64} {
  func.func @mlp_kernel(%arg0: i32, %arg1: memref<1x128xf32, #tpu.memory_space<vmem>>, %arg2: memref<32x1xf32, #tpu.memory_space<vmem>>, %arg3: memref<32x1xf32, #tpu.memory_space<vmem>>, %arg4: memref<32x32xf32, #tpu.memory_space<vmem>>, %arg5: memref<32x1xf32, #tpu.memory_space<vmem>>, %arg6: memref<2x32xf32, #tpu.memory_space<vmem>>, %arg7: memref<2x1xf32, #tpu.memory_space<vmem>>, %arg8: memref<2x128xf32, #tpu.memory_space<vmem>>) attributes {dimension_semantics = [#tpu.dimension_semantics<parallel>], iteration_bounds = array<i64: 1>, scalar_prefetch = 0 : i64, scratch_operands = 0 : i64, tpu.core_type = #tpu.core_type<tc>, window_params = [{transform_indices = @transform_0, window_bounds = array<i64: 1, 128>}, {pipeline_mode = #tpu.pipeline_mode<synchronous>, transform_indices = @transform_1, window_bounds = array<i64: 32, 1>}, {pipeline_mode = #tpu.pipeline_mode<synchronous>, transform_indices = @transform_2, window_bounds = array<i64: 32, 1>}, {pipeline_mode = #tpu.pipeline_mode<synchronous>, transform_indices = @transform_3, window_bounds = array<i64: 32, 32>}, {pipeline_mode = #tpu.pipeline_mode<synchronous>, transform_indices = @transform_4, window_bounds = array<i64: 32, 1>}, {pipeline_mode = #tpu.pipeline_mode<synchronous>, transform_indices = @transform_5, window_bounds = array<i64: 2, 32>}, {pipeline_mode = #tpu.pipeline_mode<synchronous>, transform_indices = @transform_6, window_bounds = array<i64: 2, 1>}, {transform_indices = @transform_7, window_bounds = array<i64: 2, 128>}]} {
    %c0 = arith.constant 0 : index
    %c0_0 = arith.constant 0 : index
    %0 = vector.load %arg1[%c0, %c0_0] : memref<1x128xf32, #tpu.memory_space<vmem>>, vector<1x128xf32>
    %c0_1 = arith.constant 0 : index
    %c0_2 = arith.constant 0 : index
    %1 = vector.load %arg2[%c0_1, %c0_2] : memref<32x1xf32, #tpu.memory_space<vmem>>, vector<32x1xf32>
    %2 = vector.broadcast %1 : vector<32x1xf32> to vector<32x128xf32>
    %3 = vector.broadcast %0 : vector<1x128xf32> to vector<32x128xf32>
    %4 = arith.mulf %2, %3 : vector<32x128xf32>
    %c0_3 = arith.constant 0 : index
    %c0_4 = arith.constant 0 : index
    %5 = vector.load %arg3[%c0_3, %c0_4] : memref<32x1xf32, #tpu.memory_space<vmem>>, vector<32x1xf32>
    %6 = vector.broadcast %5 : vector<32x1xf32> to vector<32x128xf32>
    %7 = arith.addf %4, %6 : vector<32x128xf32>
    %cst = arith.constant 0.000000e+00 : f32
    %8 = vector.broadcast %cst : f32 to vector<32x128xf32>
    %9 = arith.maximumf %7, %8 : vector<32x128xf32>
    %c0_5 = arith.constant 0 : index
    %c0_6 = arith.constant 0 : index
    %10 = vector.load %arg4[%c0_5, %c0_6] : memref<32x32xf32, #tpu.memory_space<vmem>>, vector<32x32xf32>
    %cst_7 = arith.constant dense<0.000000e+00> : vector<32x128xf32>
    %11 = tpu.matmul %10, %9, %cst_7 {dimension_numbers = #tpu.dot_dimension_numbers<[1], [0], [0], [1], [0, 0, 1, 1], [], []>} : vector<32x32xf32>, vector<32x128xf32>, vector<32x128xf32> -> vector<32x128xf32>
    %c0_8 = arith.constant 0 : index
    %c0_9 = arith.constant 0 : index
    %12 = vector.load %arg5[%c0_8, %c0_9] : memref<32x1xf32, #tpu.memory_space<vmem>>, vector<32x1xf32>
    %13 = vector.broadcast %12 : vector<32x1xf32> to vector<32x128xf32>
    %14 = arith.addf %11, %13 : vector<32x128xf32>
    %cst_10 = arith.constant 0.000000e+00 : f32
    %15 = vector.broadcast %cst_10 : f32 to vector<32x128xf32>
    %16 = arith.maximumf %14, %15 : vector<32x128xf32>
    %c0_11 = arith.constant 0 : index
    %c0_12 = arith.constant 0 : index
    %17 = vector.load %arg6[%c0_11, %c0_12] : memref<2x32xf32, #tpu.memory_space<vmem>>, vector<2x32xf32>
    %cst_13 = arith.constant dense<0.000000e+00> : vector<2x128xf32>
    %18 = tpu.matmul %17, %16, %cst_13 {dimension_numbers = #tpu.dot_dimension_numbers<[1], [0], [0], [1], [0, 0, 1, 1], [], []>} : vector<2x32xf32>, vector<32x128xf32>, vector<2x128xf32> -> vector<2x128xf32>
    %c0_14 = arith.constant 0 : index
    %c0_15 = arith.constant 0 : index
    %19 = vector.load %arg7[%c0_14, %c0_15] : memref<2x1xf32, #tpu.memory_space<vmem>>, vector<2x1xf32>
    %20 = vector.broadcast %19 : vector<2x1xf32> to vector<2x128xf32>
    %21 = arith.addf %18, %20 : vector<2x128xf32>
    %22 = arith.negf %21 : vector<2x128xf32>
    %23 = math.exp %22 : vector<2x128xf32>
    %cst_16 = arith.constant 1.000000e+00 : f32
    %24 = vector.broadcast %cst_16 : f32 to vector<2x128xf32>
    %25 = arith.addf %24, %23 : vector<2x128xf32>
    %26 = arith.divf %24, %25 : vector<2x128xf32>
    %c0_17 = arith.constant 0 : index
    %c0_18 = arith.constant 0 : index
    %27 = vector.load %arg8[%c0_17, %c0_18] : memref<2x128xf32, #tpu.memory_space<vmem>>, vector<2x128xf32>
    tpu.vector_store %arg8[%c0_17, %c0_18], %26 {strides = array<i32>} : memref<2x128xf32, #tpu.memory_space<vmem>>, vector<2x128xf32>,
    return
  }
  func.func @transform_0(%arg0: i32) -> (i32, i32) {
    %c0_i32 = arith.constant 0 : i32
    %c0_i32_0 = arith.constant 0 : i32
    return %c0_i32, %arg0 : i32, i32
  }
  func.func @transform_1(%arg0: i32) -> (i32, i32) {
    %c0_i32 = arith.constant 0 : i32
    %c0_i32_0 = arith.constant 0 : i32
    %c0_i32_1 = arith.constant 0 : i32
    return %c0_i32, %c0_i32_0 : i32, i32
  }
  func.func @transform_2(%arg0: i32) -> (i32, i32) {
    %c0_i32 = arith.constant 0 : i32
    %c0_i32_0 = arith.constant 0 : i32
    %c0_i32_1 = arith.constant 0 : i32
    return %c0_i32, %c0_i32_0 : i32, i32
  }
  func.func @transform_3(%arg0: i32) -> (i32, i32) {
    %c0_i32 = arith.constant 0 : i32
    %c0_i32_0 = arith.constant 0 : i32
    %c0_i32_1 = arith.constant 0 : i32
    return %c0_i32, %c0_i32_0 : i32, i32
  }
  func.func @transform_4(%arg0: i32) -> (i32, i32) {
    %c0_i32 = arith.constant 0 : i32
    %c0_i32_0 = arith.constant 0 : i32
    %c0_i32_1 = arith.constant 0 : i32
    return %c0_i32, %c0_i32_0 : i32, i32
  }
  func.func @transform_5(%arg0: i32) -> (i32, i32) {
    %c0_i32 = arith.constant 0 : i32
    %c0_i32_0 = arith.constant 0 : i32
    %c0_i32_1 = arith.constant 0 : i32
    return %c0_i32, %c0_i32_0 : i32, i32
  }
  func.func @transform_6(%arg0: i32) -> (i32, i32) {
    %c0_i32 = arith.constant 0 : i32
    %c0_i32_0 = arith.constant 0 : i32
    %c0_i32_1 = arith.constant 0 : i32
    return %c0_i32, %c0_i32_0 : i32, i32
  }
  func.func @transform_7(%arg0: i32) -> (i32, i32) {
    %c0_i32 = arith.constant 0 : i32
    %c0_i32_0 = arith.constant 0 : i32
    return %c0_i32, %arg0 : i32, i32
  }
}

</mosaic_0001>

<bundles_post_ra>
// kernel: tpu_custom_call.1
= control target key start
LH: loop header
LB: loop body
LE: loop exit
PB: predicated region body
PF: predicated region fallthrough
CT: control target
= control target key end

     0   :  { %v419_v2 = vmov 0   ;;  %s538_s0 = inlined_call_operand.vmem [shape: f32[1,128], index: 0, kind: input, shape index: {}]   ;;  %s539_s1 = inlined_call_operand.vmem [shape: f32[32,1], index: 1, kind: input, shape index: {}]   ;;  %s540_s2 = inlined_call_operand.vmem [shape: f32[32,1], index: 2, kind: input, shape index: {}]   ;;  %s541_s3 = inlined_call_operand.vmem [shape: f32[32,32], index: 3, kind: input, shape index: {}]   ;;  %s542_s4 = inlined_call_operand.vmem [shape: f32[32,1], index: 4, kind: input, shape index: {}]   ;;  %s543_s5 = inlined_call_operand.vmem [shape: f32[2,32], index: 5, kind: input, shape index: {}]   ;;  %s544_s6 = inlined_call_operand.vmem [shape: f32[2,1], index: 6, kind: input, shape index: {}]   ;;  %s545_s7 = inlined_call_operand.hbm [shape: f32[2,128], index: 7, kind: output, shape index: {}]  }
   0x1   :  { %v62_v0 = vld [vmem:[%s540_s2] sm:$0xff]  ;;  %390 = vset.pattern.permute.xlu1 %v419_v2  ;;  %389 = vset.pattern.permute.xlu0 %v419_v2  ;;  %v63_v3 = vld [vmem:[%s540_s2 + $0x8] sm:$0xff] }
   0x2   :  { %v28_v1 = vld [vmem:[%s539_s1] sm:$0xff]  ;;  %68 = vperm.xlu1 %390, %v62_v0   ;;  %v29_v4 = vld [vmem:[%s539_s1 + $0x8] sm:$0xff] }
   0x3   :  { %34 = vperm.xlu0 %389, %v28_v1  }
   0x4   :  { %12 = vsyncpa [#allocation3], 0  ;;  %v31_v5 = vld [vmem:[%s539_s1 + $0x18] sm:$0xff]  ;;  %v30_v6 = vld [vmem:[%s539_s1 + $0x10] sm:$0xff]  ;;  %vm122_vm0 = vcmask 261120   ;;  %v420_v41 = vmov 0.0|0.0  }
   0x5   :  { %v65_v7 = vld [vmem:[%s540_s2 + $0x18] sm:$0xff]  ;;  %v64_v8 = vld [vmem:[%s540_s2 + $0x10] sm:$0xff]  ;;  %v99_v9 = vld [vmem:[%s542_s4 + $0x8] sm:$0xff]  ;;  %378 = vmatprep.subr.bf16.mxu1 %v420_v41  ;;  %vm421_vm1 = vmmov 0   ;;  %v422_v42 = vmov 0.0   ;;  %s423_s10 = smov [#allocation2]  }
   0x6   :  { %73 = vperm.xlu1 %390, %v63_v3   ;;  %v98_v10 = vld [vmem:[%s542_s4] sm:$0xff]  ;;  %v101_v11 = vld [vmem:[%s542_s4 + $0x18] sm:$0xff]  ;;  %v100_v12 = vld [vmem:[%s542_s4 + $0x10] sm:$0xff]  ;;  %367 = vmatprep.mubr.msk.f32.mxu1 %vm421_vm1, %v422_v42  ;;  %s317_s11 = sshll.u32 %s423_s10, 4  ;;  %s318_s11 = int_to_ptr.vmem [resolvable:$true] %s317_s11 }
   0x7   :  { %39 = vperm.xlu0 %389, %v29_v4   ;;  %v94_v13 = vld [vmem:[%s541_s3] sm:$0xff]  ;;  %v95_v38 = vld [vmem:[%s541_s3 + $0x8] sm:$0xff]  ;;  %v96_v39 = vld [vmem:[%s541_s3 + $0x10] sm:$0xff]  ;;  %s395_s12 = scalar_lea.vmem %s318_s11, 32  ;;  %p400_p1 = scmp.lt.s32.totalorder %s318_s11, %s318_s11 }
   0x8   :  { %v225_v14 = vld [vmem:[%s544_s6] sm:$0x3]  ;;  %353 = vmatprep.mubr.msk.f32.mxu0 %vm122_vm0, %v94_v13  ;;  %v97_v40 = vld [vmem:[%s541_s3 + $0x18] sm:$0xff]  ;;  %p396_p0 = scmp.ne.s32.totalorder %s318_s11, %s395_s12  ;;  %p401_p2 = scmp.lt.s32.totalorder %s395_s12, %s395_s12 }
   0x9   :  { %v325_v15 = vld [vmem:[%s538_s0] ss:$0 sm:$0xff] }
   0xa   :  { %49 = vperm.xlu1 %390, %v31_v5   ;;  %v224_v61 = vld [vmem:[%s543_s5] sm:$0x3]  ;;  %p402_p3 = por %p401_p2, %p400_p1 }
   0xb   :  { %44 = vperm.xlu0 %389, %v30_v6  }
   0xc   :  { %p403_p4 = pnand %p402_p3, %p396_p0 }
   0xe   :  { %83 = vperm.xlu1 %390, %v65_v7  }
   0xf   :  { %78 = vperm.xlu0 %389, %v64_v8  }
  0x12   :  { %109 = vperm.xlu1 %390, %v99_v9  }
  0x13   :  { %104 = vperm.xlu0 %389, %v98_v10  }
  0x16   :  { %119 = vperm.xlu1 %390, %v101_v11  }
  0x17   :  { %114 = vperm.xlu0 %389, %v100_v12  }
  0x1b   :  { %228 = vperm.xlu0 %389, %v225_v14  }
  0x81   :  { %v69_v16 = vpop.permute.xlu1 %68 }
  0x82   :  { %v35_v17 = vpop.permute.xlu0 %34 }
  0x83   :  { %v58_v18 = vmul.f32 %v325_v15, %v35_v17 }
  0x85   :  { %v74_v19 = vpop.permute.xlu1 %73  ;;  %v86_v21 = vadd.f32 %v69_v16, %v58_v18 }
  0x86   :  { %v40_v20 = vpop.permute.xlu0 %39 }
  0x87   :  { %v59_v22 = vmul.f32 %v325_v15, %v40_v20  ;;  %v90_v26 = vmax.f32 %v86_v21, 0.0 }
  0x89   :  { %v87_v23 = vadd.f32 %v74_v19, %v59_v22  ;;  %v50_v24 = vpop.permute.xlu1 %49 }
  0x8a   :  { %v45_v25 = vpop.permute.xlu0 %44  ;;  %v61_v28 = vmul.f32 %v325_v15, %v50_v24 }
  0x8b   :  { %v91_v27 = vmax.f32 %v87_v23, 0.0  ;;  %v60_v29 = vmul.f32 %v325_v15, %v45_v25 }
  0x8d   :  { %v370_v30 = vpack.c.bf16 %v91_v27, %v90_v26  ;;  %v84_v31 = vpop.permute.xlu1 %83 }
  0x8e   :  { %v79_v32 = vpop.permute.xlu0 %78  ;;  %v89_v33 = vadd.f32 %v84_v31, %v61_v28 }
  0x8f   :  { %v88_v34 = vadd.f32 %v79_v32, %v60_v29  ;;  %371 = vmatprep.subr.bf16.mxu0 %v370_v30 }
  0x90   :  { %373 = vmatpush3.bf16.msra.mxu0 %v370_v30  ;;  %v93_v35 = vmax.f32 %v89_v33, 0.0 }
  0x91   :  { %v92_v36 = vmax.f32 %v88_v34, 0.0  ;;  %v110_v43 = vpop.permute.xlu1 %109 }
  0x92   :  { %v105_v44 = vpop.permute.xlu0 %104 }
  0x93   :  { %v374_v37 = vpack.c.bf16 %v93_v35, %v92_v36 }
  0x95   :  { %375 = vmatprep.subr.bf16.mxu0 %v374_v37  ;;  %v120_v50 = vpop.permute.xlu1 %119 }
  0x96   :  { %377 = vmatpush3.bf16.msra.mxu0 %v374_v37  ;;  %v115_v53 = vpop.permute.xlu0 %114 }
  0x99   :  { %354 = vmatmul.mubr.msk.f32.vlgmr.msra.gmra.mrb[0].mxu0 %vm122_vm0, %v95_v38 }
  0x9a   :  { %356 = vmatprep.mubr.msk.f32.mxu0 %vm122_vm0, %v96_v39  ;;  %v229_v62 = vpop.permute.xlu0 %228 }
  0x9d   :  { %357 = vmatmul.mubr.msk.f32.gmra.mrb[2].mxu0 %vm122_vm0, %v97_v40 }
 0x16c   :  { %v355_v45 = vpop.f32.mrb[0].mxu0 }
 0x16d   :  { %v207_v46 = vadd.f32 %v355_v45, %v110_v43  ;;  %v201_v47 = vpop.f32.mrb[1].mxu0 }
 0x16e   :  { %v202_v48 = vadd.f32 %v201_v47, %v105_v44 }
 0x16f   :  { %v221_v49 = vmax.f32 %v207_v46, 0.0 }
 0x170   :  { %v220_v51 = vmax.f32 %v202_v48, 0.0  ;;  %v358_v52 = vpop.f32.mrb[2].mxu0 }
 0x171   :  { %v217_v54 = vadd.f32 %v358_v52, %v120_v50  ;;  %v211_v55 = vpop.f32.mrb[3].mxu0 }
 0x172   :  { %v212_v56 = vadd.f32 %v211_v55, %v115_v53  ;;  %v379_v57 = vpack.c.bf16 %v221_v49, %v220_v51 }
 0x173   :  { %v223_v58 = vmax.f32 %v217_v54, 0.0 }
 0x174   :  { %v222_v59 = vmax.f32 %v212_v56, 0.0  ;;  %380 = vmatpush3.bf16.msra.mxu1 %v379_v57 }
 0x175   :  { %381 = vmatprep.subr.bf16.mxu1 %v420_v41 }
 0x176   :  { %v382_v60 = vpack.c.bf16 %v223_v58, %v222_v59 }
 0x178   :  { %383 = vmatpush3.bf16.msra.mxu1 %v382_v60 }
 0x17b   :  { %368 = vmatmul.mubr.msk.f32.vlgmr.msra.gmra.mrb[0].mxu1 %vm122_vm0, %v224_v61 }
 0x24e   :  { %v300_v63 = vpop.f32.mrb[0].mxu1 }
 0x24f   :  { %v301_v0 = vadd.f32 %v300_v63, %v229_v62  ;;  %v369_v1 = vpop.f32.mrb[1].mxu1 }
 0x251   :  { %v331_v2 = vmul.f32 -1.442695, %v301_v0 }
 0x253   :  { %391 = vpow2.f32 %v331_v2 }
 0x25d   :  { %v392_v3 = vpop.eup %391 }
 0x25e   :  { %v307_v4 = vadd.f32 1.0, %v392_v3 }
 0x260   :  { %393 = vrcp.f32 %v307_v4 }
 0x26a   :  { %v394_v5 = vpop.eup %393 }
 0x26b   :  { %310 = vst [vmem:[#allocation2] sm:$0x3] %v394_v5 }
 0x26c   :  { %406 = shalt.err (!%p403_p4)
}
 0x26d   :  { %s407_s14 = scalar_lea.hbm %s545_s7, 32 }
 0x26e   :  { %p408_p5 = scmp.ne.s32.totalorder %s545_s7, %s407_s14  ;;  %p411_p6 = scmp.lt.u32.totalorder %s407_s14, %s545_s7 }
 0x270   :  { %p413_p7 = pnand %p411_p6, %p408_p5 }
 0x272   :  { %416 = shalt.err (!%p413_p7)
}
 0x273   :  { %320 = dma.vmem_to_hbm [thread:$0]  %s318_s11, 32, %s545_s7, [#allocation3]  }
 0x274   :  { %417 = dma.done.wait [#allocation3], 32  }
 0x275   :  { %418 = vsyncadd [#allocation3], 4294967264 }
 0x276   :  { %324 = vsyncpa [#allocation3], 1 }

</bundles_post_ra>
